<compile_context>
chip_gen: v7x
topology: tpu7x:2x2x1
jax: 0.10.0
libtpu: 0.0.40
codegen_flags: <defaults>
</compile_context>

<pallas_src>
import functools

import numpy as np
import jax
import jax.numpy as jnp
from jax.experimental import pallas as pl
from jax.experimental.pallas import tpu as pltpu


# ---------------------------------------------------------------------------
# One-time probe: pin down pltpu.roll's rotation direction (vs. np.roll) so the
# tap shifts below are direction-proof across jax / Mosaic versions.
# ---------------------------------------------------------------------------
@functools.lru_cache(maxsize=None)
def _roll_matches_numpy() -> bool:
    def _k(x_ref, o_ref):
        o_ref[...] = pltpu.roll(x_ref[...], 1, 0)

    with jax.ensure_compile_time_eval():
        x = jnp.arange(16 * 128, dtype=jnp.float32).reshape(16, 128)
        y = pl.pallas_call(
            _k, out_shape=jax.ShapeDtypeStruct((16, 128), jnp.float32))(x)
        return bool(jnp.array_equal(y, jnp.roll(x, 1, axis=0)))


# ---------------------------------------------------------------------------
# Wrapper-side constant builders (zero in-kernel VALU cost)
# ---------------------------------------------------------------------------
def _tap_masks(hi, wi, tb):
    """(9, tb*hi*wi, 1) f32 zero-padding validity mask per 3x3 tap."""
    ii = np.repeat(np.arange(hi), wi)
    jj = np.tile(np.arange(wi), hi)
    masks = []
    for k in range(9):
        dy, dx = k // 3, k % 3
        valid = ((ii + dy - 1 >= 0) & (ii + dy - 1 < hi) &
                 (jj + dx - 1 >= 0) & (jj + dx - 1 < wi))
        masks.append(valid.astype(np.float32))
    m = np.stack(masks, axis=0)[:, :, None]           # (9, hi*wi, 1)
    return np.tile(m, (1, tb, 1))                      # (9, tb*hi*wi, 1)


def _even_select_matrix(hi, wi):
    """One-hot (hi/2*wi/2, hi*wi) matrix selecting the even/even polyphase rows."""
    ho, wo = hi // 2, wi // 2
    g = np.zeros((ho * wo, hi * wi), np.float32)
    for oi in range(ho):
        for oj in range(wo):
            g[oi * wo + oj, (2 * oi) * wi + 2 * oj] = 1.0
    return g


def _pick_batch_tile(b, max_tile=8):
    """Largest divisor of b that keeps >= 2 grid steps (v7x megacore), capped."""
    best = 1
    for t in range(1, min(b, max_tile) + 1):
        if b % t == 0 and (b // t >= 2 or b == 1):
            best = t
    return best


# ---------------------------------------------------------------------------
# The fused kernel: one grid step == TB batch elements, everything in VMEM.
# ---------------------------------------------------------------------------
def _meta_classifier_kernel(
        x_ref, wp_ref, bp_ref,
        w0_ref, b0_ref, w11_ref, b11_ref, w12_ref, b12_ref,
        w3_ref, b3_ref, w21_ref, b21_ref, w22_ref, b22_ref,
        fcw_ref, fcb_ref,
        g1_ref, g2_ref, mfull_ref, mhalf_ref, mquar_ref,
        o_ref, *, h, w, tb, roll_sign):

    def conv3x3(x, mask_ref, w9_ref, wi):
        """Fused 3x3 / pad=1 / stride-1 conv on a flattened (tb*hi*wi, cm) activation.

        Tap k = pltpu.roll (XLU) of x by the flattened spatial offset, times a
        precomputed (rows, 1) border mask; the 9 taps are concatenated along lanes
        and contracted against w9 (9*cm, cm) in a single K=9*cm MXU matmul.
        """
        rows = x.shape[0]
        taps = []
        for k in range(9):                              # static, unrolled
            dy, dx = k // 3, k % 3
            s = (dy - 1) * wi + (dx - 1)                # tap k reads x[p + s]
            if s == 0:
                taps.append(x)                          # centre tap: no shift, no border
            else:
                shifted = pltpu.roll(x, (roll_sign * s) % rows, 0)
                taps.append(shifted * mask_ref[k])
        patches = jnp.concatenate(taps, axis=1).astype(jnp.bfloat16)
        return jnp.dot(patches, w9_ref[...], preferred_element_type=jnp.float32)

    def stride2_select(z, g_ref, n_in):
        """Keep the even/even polyphase rows of each image (one small one-hot matmul)."""
        g = g_ref[...]
        zb = z.astype(jnp.bfloat16)
        parts = [jnp.dot(g, zb[t * n_in:(t + 1) * n_in, :],
                         preferred_element_type=jnp.float32) for t in range(tb)]
        return parts[0] if tb == 1 else jnp.concatenate(parts, axis=0)

    hh, wh = h // 2, w // 2
    hq, wq = h // 4, w // 4
    n_full, n_half, n_quar = h * w, hh * wh, hq * wq

    # convP (1x1) + ReLU
    a = jnp.dot(x_ref[...], wp_ref[...], preferred_element_type=jnp.float32) + bp_ref[...]
    a = jnp.maximum(a, 0.0)                                       # (tb*h*w, cm) f32

    # convM[0]: 3x3 stride-2 + ReLU  (conv at input resolution, then polyphase select)
    z = conv3x3(a, mfull_ref, w0_ref, w)
    m0 = jnp.maximum(stride2_select(z, g1_ref, n_full) + b0_ref[...], 0.0)

    # ResBlock 1: x + conv2(relu(conv1(relu(x)))); m0 is already post-ReLU, so the
    # inner relu on its input is a no-op and is skipped.
    r = conv3x3(m0, mhalf_ref, w11_ref, wh) + b11_ref[...]
    r = conv3x3(jnp.maximum(r, 0.0), mhalf_ref, w12_ref, wh) + b12_ref[...]
    rb1 = m0 + r

    # convM[3]: 3x3 stride-2 + ReLU
    z = conv3x3(rb1, mhalf_ref, w3_ref, wh)
    m3 = jnp.maximum(stride2_select(z, g2_ref, n_half) + b3_ref[...], 0.0)

    # ResBlock 2
    r = conv3x3(m3, mquar_ref, w21_ref, wq) + b21_ref[...]
    r = conv3x3(jnp.maximum(r, 0.0), mquar_ref, w22_ref, wq) + b22_ref[...]
    rb2 = m3 + r                                                  # (tb*n_quar, cm) f32

    # Head: per-image AdaptiveAvgPool2d(1) + Linear(cm, 1) + sigmoid  (all f32)
    inv = 1.0 / float(n_quar)
    for t in range(tb):
        pooled = jnp.sum(rb2[t * n_quar:(t + 1) * n_quar, :], axis=0, keepdims=True) * inv
        logit = jnp.sum(pooled * fcw_ref[...], axis=1, keepdims=True) + fcb_ref[...]
        o_ref[t] = 1.0 / (1.0 + jnp.exp(-logit))                  # (1, 1)


# ---------------------------------------------------------------------------
# Wrapper: one-time layout glue + the single fused pallas_call
# ---------------------------------------------------------------------------
def meta_classifier_forward(params, feat_ref, feat):
    b = feat_ref.shape[0]
    h, w = feat_ref.shape[2], feat_ref.shape[3]
    cin = feat_ref.shape[1] + feat.shape[1]
    cm = params["convP_b"].shape[0]
    assert h % 4 == 0 and w % 4 == 0, "two stride-2 convs need H, W divisible by 4"

    tb = _pick_batch_tile(b)
    roll_sign = -1 if _roll_matches_numpy() else 1

    # channel concat (NCHW) -> NHWC -> flattened (B*H*W, Cin) bf16, done once.
    x = jnp.concatenate([feat_ref, feat], axis=1)
    x = jnp.transpose(x, (0, 2, 3, 1)).reshape(b * h * w, cin).astype(jnp.bfloat16)

    def w9(name):   # HWIO (3,3,cm,cm) -> (9*cm, cm): row block k=dy*3+dx holds W[dy,dx]
        return params[name].reshape(9 * cm, cm).astype(jnp.bfloat16)

    def bias2(name):
        return params[name].reshape(1, -1).astype(jnp.float32)

    consts = [
        params["convP_w"].astype(jnp.bfloat16), bias2("convP_b"),
        w9("m0_w"), bias2("m0_b"),
        w9("rb1_c1_w"), bias2("rb1_c1_b"),
        w9("rb1_c2_w"), bias2("rb1_c2_b"),
        w9("m3_w"), bias2("m3_b"),
        w9("rb2_c1_w"), bias2("rb2_c1_b"),
        w9("rb2_c2_w"), bias2("rb2_c2_b"),
        params["fc_w"].reshape(1, cm).astype(jnp.float32),
        params["fc_b"].reshape(1, 1).astype(jnp.float32),
        jnp.asarray(_even_select_matrix(h, w), jnp.bfloat16),
        jnp.asarray(_even_select_matrix(h // 2, w // 2), jnp.bfloat16),
        jnp.asarray(_tap_masks(h, w, tb), jnp.float32),
        jnp.asarray(_tap_masks(h // 2, w // 2, tb), jnp.float32),
        jnp.asarray(_tap_masks(h // 4, w // 4, tb), jnp.float32),
    ]

    def const_spec(arr):        # full block, resident across the batch grid axis
        nd = arr.ndim
        return pl.BlockSpec(arr.shape, lambda i, _nd=nd: (0,) * _nd)

    in_specs = [pl.BlockSpec((tb * h * w, cin), lambda i: (i, 0))]
    in_specs += [const_spec(a) for a in consts]

    out = pl.pallas_call(
        functools.partial(_meta_classifier_kernel,
                          h=h, w=w, tb=tb, roll_sign=roll_sign),
        out_shape=jax.ShapeDtypeStruct((b, 1, 1), jnp.float32),
        grid=(b // tb,),
        in_specs=in_specs,
        out_specs=pl.BlockSpec((tb, 1, 1), lambda i: (i, 0, 0)),
        compiler_params=pltpu.CompilerParams(
            dimension_semantics=("parallel",)),     # v7x: shard batch over 2 TCs
    )(x, *consts)
    return out.reshape(b, 1)


# ---------------------------------------------------------------------------
# Deterministic parameter init (synthetic, f32 storage, HWIO conv weights)
# ---------------------------------------------------------------------------
def init_params(key, channels_in, channels_mem):
    keys = jax.random.split(key, 16)

    def conv_w(k, kh, kw, cin, cout):
        scale = 1.0 / jnp.sqrt(float(kh * kw * cin))
        return jax.random.normal(k, (kh, kw, cin, cout), jnp.float32) * scale

    cm = channels_mem
    return {
        "convP_w": conv_w(keys[0], 1, 1, channels_in, cm).reshape(channels_in, cm),
        "convP_b": jax.random.normal(keys[1], (cm,), jnp.float32) * 0.01,
        "m0_w": conv_w(keys[2], 3, 3, cm, cm),
        "m0_b": jax.random.normal(keys[3], (cm,), jnp.float32) * 0.01,
        "rb1_c1_w": conv_w(keys[4], 3, 3, cm, cm),
        "rb1_c1_b": jax.random.normal(keys[5], (cm,), jnp.float32) * 0.01,
        "rb1_c2_w": conv_w(keys[6], 3, 3, cm, cm),
        "rb1_c2_b": jax.random.normal(keys[7], (cm,), jnp.float32) * 0.01,
        "m3_w": conv_w(keys[8], 3, 3, cm, cm),
        "m3_b": jax.random.normal(keys[9], (cm,), jnp.float32) * 0.01,
        "rb2_c1_w": conv_w(keys[10], 3, 3, cm, cm),
        "rb2_c1_b": jax.random.normal(keys[11], (cm,), jnp.float32) * 0.01,
        "rb2_c2_w": conv_w(keys[12], 3, 3, cm, cm),
        "rb2_c2_b": jax.random.normal(keys[13], (cm,), jnp.float32) * 0.01,
        "fc_w": jax.random.normal(keys[14], (cm,), jnp.float32) * 0.1,
        "fc_b": jax.random.normal(keys[15], (1,), jnp.float32) * 0.01,
    }


if __name__ == "__main__":
    key = jax.random.PRNGKey(0)
    k_p, k_a, k_b = jax.random.split(key, 3)

    channels_in, channels_mem = 8, 32
    B, H, W = 2, 16, 16
    # PyTorch-style NCHW inputs; channels_in = C(feat_ref) + C(feat)
    feat_ref = jax.random.normal(k_a, (B, channels_in // 2, H, W), jnp.float32)
    feat = jax.random.normal(k_b, (B, channels_in // 2, H, W), jnp.float32)
    params = init_params(k_p, channels_in, channels_mem)

    _roll_matches_numpy()          # warm the rotate-direction probe outside jit

    fwd = jax.jit(meta_classifier_forward)
    out = jax.block_until_ready(fwd(params, feat_ref, feat))

    assert out.shape == (B, 1), out.shape
    assert bool(jnp.all(jnp.isfinite(out)))
    assert bool(jnp.all((out >= 0.0) & (out <= 1.0)))
    print("KERNEL_OK")
</pallas_src>

<mosaic_0001>
module attributes {stable_mosaic.version = 11 : i64} {
  func.func @_k(%arg0: memref<16x128xf32, #tpu.memory_space<vmem>>, %arg1: memref<16x128xf32, #tpu.memory_space<vmem>>) attributes {dimension_semantics = [], scalar_prefetch = 0 : i64, scratch_operands = 0 : i64, tpu.core_type = #tpu.core_type<tc>} {
    %c0 = arith.constant 0 : index
    %c0_0 = arith.constant 0 : index
    %0 = vector.load %arg0[%c0, %c0_0] : memref<16x128xf32, #tpu.memory_space<vmem>>, vector<16x128xf32>
    %c1_i32 = arith.constant 1 : i32
    %1 = tpu.dynamic_rotate %0 by %c1_i32 dim 0 : vector<16x128xf32>, i32 -> vector<16x128xf32>
    %c0_1 = arith.constant 0 : index
    %c0_2 = arith.constant 0 : index
    %2 = vector.load %arg1[%c0_1, %c0_2] : memref<16x128xf32, #tpu.memory_space<vmem>>, vector<16x128xf32>
    tpu.vector_store %arg1[%c0_1, %c0_2], %1 {strides = array<i32>} : memref<16x128xf32, #tpu.memory_space<vmem>>, vector<16x128xf32>,
    return
  }
}

</mosaic_0001>

<bundles_post_ra>
// kernel: tpu_custom_call.1
= control target key start
LH: loop header
LB: loop body
LE: loop exit
PB: predicated region body
PF: predicated region fallthrough
CT: control target
= control target key end

     0   :  { %6 = vsyncpa [#allocation3], 0  ;;  %s147_s0 = inlined_call_operand.hbm [shape: f32[16,128], index: 0, kind: input, shape index: {}]   ;;  %s148_s1 = inlined_call_operand.hbm [shape: f32[16,128], index: 1, kind: output, shape index: {}]  }
   0x1   :  { %7 = vsyncpa [#allocation4], 0  ;;  %s103_s6 = smov [#allocation2]   ;;  %s55_s10 = scalar_lea.hbm %s147_s0, 256 }
   0x2   :  { %s13_s7 = sshll.u32 %s103_s6, 4  ;;  %p56_p0 = scmp.ne.s32.totalorder %s147_s0, %s55_s10  ;;  %s14_s7 = int_to_ptr.vmem [resolvable:$true] %s13_s7 }
   0x3   :  { %p59_p1 = scmp.lt.u32.totalorder %s55_s10, %s147_s0 }
   0x5   :  { %p61_p2 = pnand %p59_p1, %p56_p0 }
   0x7   :  { %64 = shalt.err (!%p61_p2)
}
   0x8   :  { %s65_s15 = scalar_lea.vmem %s14_s7, 256  ;;  %p70_p4 = scmp.lt.s32.totalorder %s14_s7, %s14_s7 }
   0x9   :  { %p66_p3 = scmp.ne.s32.totalorder %s14_s7, %s65_s15  ;;  %p71_p5 = scmp.lt.s32.totalorder %s65_s15, %s65_s15 }
   0xb   :  { %p72_p6 = por %p71_p5, %p70_p4 }
   0xd   :  { %p73_p7 = pnand %p72_p6, %p66_p3 }
   0xf   :  { %76 = shalt.err (!%p73_p7)
}
  0x10   :  { %s104_s16 = smov 128   ;;  %s105_s17 = smov 8  }
  0x11   :  { %19 = dma.hbm_to_vmem [thread:$0]  %s147_s0, 256, %s14_s7, [#allocation3], %s104_s16, %s104_s16, %s105_s17  }
  0x12   :  { %99 = dma.done.wait [#allocation3], 256  }
  0x13   :  { %100 = vsyncadd [#allocation3], 4294967040  ;;  %v27_v0 = vlaneseq  ;;  %s106_s20 = smov [#allocation5]   ;;  %v23_v2 = vld [vmem:[#allocation2] sm:$0xff]  ;;  %v24_v3 = vld [vmem:[#allocation2 + $0x8] sm:$0xff] }
  0x14   :  { %s39_s21 = sshll.u32 %s106_s20, 4  ;;  %v25_v4 = vrot.slane %v23_v2, 7  ;;  %v26_v5 = vrot.slane %v24_v3, 7  ;;  %s40_s21 = int_to_ptr.vmem [resolvable:$true] %s39_s21 }
  0x15   :  { %v28_v1 = vshrl.u32 %v27_v0, 7  ;;  %s77_s22 = scalar_lea.vmem %s40_s21, 256  ;;  %p82_p9 = scmp.lt.s32.totalorder %s40_s21, %s40_s21 }
  0x16   :  { %p78_p8 = scmp.ne.s32.totalorder %s40_s21, %s77_s22  ;;  %p83_p10 = scmp.lt.s32.totalorder %s77_s22, %s77_s22 }
  0x17   :  { %vm29_vm0 = vcmp.lt.s32.totalorder %v28_v1, 1 }
  0x18   :  { %v31_v6 = vsel %vm29_vm0, %v26_v5, %v25_v4  ;;  %v30_v7 = vsel %vm29_vm0, %v25_v4, %v26_v5  ;;  %p84_p11 = por %p83_p10, %p82_p9 }
  0x19   :  { %32 = vst [vmem:[#allocation5] sm:$0xff] %v31_v6  ;;  %33 = vst [vmem:[#allocation5 + $0x8] sm:$0xff] %v30_v7 }
  0x1a   :  { %p85_p12 = pnand %p84_p11, %p78_p8 }
  0x1c   :  { %88 = shalt.err (!%p85_p12)
}
  0x1d   :  { %s89_s24 = scalar_lea.hbm %s148_s1, 256 }
  0x1e   :  { %p90_p13 = scmp.ne.s32.totalorder %s148_s1, %s89_s24  ;;  %p93_p0 = scmp.lt.u32.totalorder %s89_s24, %s148_s1 }
  0x20   :  { %p95_p1 = pnand %p93_p0, %p90_p13 }
  0x22   :  { %98 = shalt.err (!%p95_p1)
}
  0x23   :  { %45 = dma.vmem_to_hbm [thread:$0]  %s40_s21, 256, %s148_s1, [#allocation4], %s104_s16, %s104_s16, %s105_s17  }
  0x24   :  { %101 = dma.done.wait [#allocation4], 256  }
  0x25   :  { %102 = vsyncadd [#allocation4], 4294967040 }
  0x26   :  { %49 = vsyncpa [#allocation3], 1 }
  0x27   :  { %50 = vsyncpa [#allocation4], 1 }

</bundles_post_ra>
